<compile_context>
chip_gen: v5e
topology: v5e:2x2
jax: 0.10.0
libtpu: 0.0.40
codegen_flags: <defaults>
</compile_context>

<pallas_src>
import jax
import jax.numpy as jnp
from jax.experimental import pallas as pl
from jax.experimental.pallas import tpu as pltpu

LANE = 128                 # TPU lane width; hidden3 padded to this.
H1, H2, H3 = 128, 128, 64  # hidden sizes from the PyTorch module.
OUT_PAD = 8                # num_actions (2) padded to 8 output lanes (narrow writeback).


def _round_up(n, m):
    return ((n + m - 1) // m) * m


def dqn_kernel(x_ref,
               w1_ref, b1_ref,
               w2_ref, b2_ref,
               w3_ref, b3_ref,
               w4_ref, b4_ref,
               out_ref):
    # x arrives already in bf16; bf16 MXU operands, f32 accumulation,
    # f32 bias add + ReLU on the accumulator (keeps v5e happy: no bf16 VALU there).
    x = x_ref[...]

    h = jnp.dot(x, w1_ref[...], preferred_element_type=jnp.float32) + b1_ref[...]
    h = jnp.maximum(h, 0.0).astype(jnp.bfloat16)

    h = jnp.dot(h, w2_ref[...], preferred_element_type=jnp.float32) + b2_ref[...]
    h = jnp.maximum(h, 0.0).astype(jnp.bfloat16)

    h = jnp.dot(h, w3_ref[...], preferred_element_type=jnp.float32) + b3_ref[...]
    h = jnp.maximum(h, 0.0).astype(jnp.bfloat16)            # padded cols stay exactly 0

    out = jnp.dot(h, w4_ref[...], preferred_element_type=jnp.float32) + b4_ref[...]
    out_ref[...] = out.astype(out_ref.dtype)                 # narrow (tb, 8) f32 store


def _pad_params_for_kernel(params):
    """bf16 weights, f32 biases; layer3 padded to 128 lanes, layer4 to 8 output lanes."""
    num_actions = params["w4"].shape[1]
    w1 = params["w1"].astype(jnp.bfloat16)                               # (S, 128)
    w2 = params["w2"].astype(jnp.bfloat16)                               # (128, 128)
    w3 = jnp.zeros((H2, LANE), jnp.bfloat16).at[:, :H3].set(
        params["w3"].astype(jnp.bfloat16))                               # (128, 128)
    w4 = jnp.zeros((LANE, OUT_PAD), jnp.bfloat16).at[:H3, :num_actions].set(
        params["w4"].astype(jnp.bfloat16))                               # (128, 8)
    b1 = params["b1"].astype(jnp.float32)                                # (1, 128)
    b2 = params["b2"].astype(jnp.float32)                                # (1, 128)
    b3 = jnp.zeros((1, LANE), jnp.float32).at[:, :H3].set(params["b3"])  # (1, 128)
    b4 = jnp.zeros((1, OUT_PAD), jnp.float32).at[:, :num_actions].set(params["b4"])
    return w1, b1, w2, b2, w3, b3, w4, b4


def dqn_forward(x, params, *, block_b=2048):
    """x: (B, num_states) float32; params: dict of (w1,b1,...,w4,b4). Returns (B, A) f32."""
    B, num_states = x.shape
    num_actions = params["w4"].shape[1]

    # Batch tiling:
    #  * 16-row alignment so bf16 activation vregs are fully packed,
    #  * large tile (block_b) to amortize per-grid-step overhead,
    #  * tile capped near half the padded batch so the grid has >= 2 steps when the
    #    batch is big enough -> v7x megacore can use both TensorCores.
    b16 = max(16, _round_up(B, 16))
    tb = min(block_b, max(16, _round_up(pl.cdiv(b16, 2), 16)))
    b_pad = _round_up(b16, tb)

    # Pre-cast x to bf16 in the wrapper (halves input DMA bytes, drops in-kernel cast).
    x = x.astype(jnp.bfloat16)
    if b_pad != B:
        x = jnp.pad(x, ((0, b_pad - B), (0, 0)))

    w1, b1, w2, b2, w3, b3, w4, b4 = _pad_params_for_kernel(params)
    args = (x, w1, b1, w2, b2, w3, b3, w4, b4)

    batch_map = lambda i: (i, 0)      # x / out walk the batch axis
    resident_map = lambda i: (0, 0)   # weights & biases stay resident across iterations

    in_specs = [pl.BlockSpec((tb, num_states), batch_map)]
    for a in args[1:]:
        in_specs.append(pl.BlockSpec(a.shape, resident_map))
    out_specs = pl.BlockSpec((tb, OUT_PAD), batch_map)

    flops = 2 * b_pad * (num_states * H1 + H1 * H2 + H2 * LANE + LANE * OUT_PAD)
    bytes_accessed = (sum(a.size * a.dtype.itemsize for a in args)
                      + b_pad * OUT_PAD * 4)

    out_padded = pl.pallas_call(
        dqn_kernel,
        out_shape=jax.ShapeDtypeStruct((b_pad, OUT_PAD), jnp.float32),
        grid=(b_pad // tb,),
        in_specs=in_specs,
        out_specs=out_specs,
        compiler_params=pltpu.CompilerParams(
            dimension_semantics=("parallel",)),
        cost_estimate=pl.CostEstimate(
            flops=flops, transcendentals=0, bytes_accessed=bytes_accessed),
    )(*args)

    return out_padded[:B, :num_actions]


def init_dqn_params(key, num_states, num_actions):
    """PyTorch-style Linear init: U(-1/sqrt(fan_in), 1/sqrt(fan_in)), deterministic."""
    dims = [(num_states, H1), (H1, H2), (H2, H3), (H3, num_actions)]
    params = {}
    keys = jax.random.split(key, 2 * len(dims))
    for i, (fan_in, fan_out) in enumerate(dims):
        bound = 1.0 / (fan_in ** 0.5)
        params[f"w{i + 1}"] = jax.random.uniform(
            keys[2 * i], (fan_in, fan_out), minval=-bound, maxval=bound, dtype=jnp.float32)
        params[f"b{i + 1}"] = jax.random.uniform(
            keys[2 * i + 1], (1, fan_out), minval=-bound, maxval=bound, dtype=jnp.float32)
    return params


def dqn_reference(x, params, *, mxu_bf16=True):
    """Plain-JAX reference mirroring the PyTorch forward (optionally bf16 matmul inputs)."""
    def cast(a):
        return a.astype(jnp.bfloat16) if mxu_bf16 else a

    h = cast(x)
    h = jnp.dot(h, cast(params["w1"]), preferred_element_type=jnp.float32) + params["b1"]
    h = cast(jnp.maximum(h, 0.0))
    h = jnp.dot(h, cast(params["w2"]), preferred_element_type=jnp.float32) + params["b2"]
    h = cast(jnp.maximum(h, 0.0))
    h = jnp.dot(h, cast(params["w3"]), preferred_element_type=jnp.float32) + params["b3"]
    h = cast(jnp.maximum(h, 0.0))
    return jnp.dot(h, cast(params["w4"]), preferred_element_type=jnp.float32) + params["b4"]


if __name__ == "__main__":
    # FlappyBird PLE game state has 8 scalar features, 2 actions (flap / no-op).
    num_states = 8
    num_actions = 2

    key = jax.random.PRNGKey(0)
    k_params, k_x = jax.random.split(key)
    params = init_dqn_params(k_params, num_states, num_actions)

    # Small primary case, plus a case that exercises batch padding and a multi-step grid.
    for batch in (8, 100):
        k_x, k_use = jax.random.split(k_x)
        x = jax.random.normal(k_use, (batch, num_states), dtype=jnp.float32)

        out = dqn_forward(x, params)
        out = jax.block_until_ready(out)

        ref_bf16 = dqn_reference(x, params, mxu_bf16=True)   # mirrors kernel numerics
        ref_f32 = dqn_reference(x, params, mxu_bf16=False)   # original fp32 semantics

        assert out.shape == (batch, num_actions)
        assert jnp.allclose(out, ref_bf16, atol=1e-2, rtol=1e-2), "mismatch vs bf16 reference"
        assert jnp.allclose(out, ref_f32, atol=5e-2, rtol=5e-2), "mismatch vs f32 reference"

    print("KERNEL_OK")
</pallas_src>

<mosaic_0001>
module attributes {stable_mosaic.version = 11 : i64} {
  func.func @dqn_kernel(%arg0: i32, %arg1: memref<16x8xbf16, #tpu.memory_space<vmem>>, %arg2: memref<8x128xbf16, #tpu.memory_space<vmem>>, %arg3: memref<1x128xf32, #tpu.memory_space<vmem>>, %arg4: memref<128x128xbf16, #tpu.memory_space<vmem>>, %arg5: memref<1x128xf32, #tpu.memory_space<vmem>>, %arg6: memref<128x128xbf16, #tpu.memory_space<vmem>>, %arg7: memref<1x128xf32, #tpu.memory_space<vmem>>, %arg8: memref<128x8xbf16, #tpu.memory_space<vmem>>, %arg9: memref<1x8xf32, #tpu.memory_space<vmem>>, %arg10: memref<16x8xf32, #tpu.memory_space<vmem>>) attributes {dimension_semantics = [#tpu.dimension_semantics<parallel>], iteration_bounds = array<i64: 1>, scalar_prefetch = 0 : i64, scratch_operands = 0 : i64, tpu.core_type = #tpu.core_type<tc>, window_params = [{transform_indices = @transform_0, window_bounds = array<i64: 16, 8>}, {pipeline_mode = #tpu.pipeline_mode<synchronous>, transform_indices = @transform_1, window_bounds = array<i64: 8, 128>}, {pipeline_mode = #tpu.pipeline_mode<synchronous>, transform_indices = @transform_2, window_bounds = array<i64: 1, 128>}, {pipeline_mode = #tpu.pipeline_mode<synchronous>, transform_indices = @transform_3, window_bounds = array<i64: 128, 128>}, {pipeline_mode = #tpu.pipeline_mode<synchronous>, transform_indices = @transform_4, window_bounds = array<i64: 1, 128>}, {pipeline_mode = #tpu.pipeline_mode<synchronous>, transform_indices = @transform_5, window_bounds = array<i64: 128, 128>}, {pipeline_mode = #tpu.pipeline_mode<synchronous>, transform_indices = @transform_6, window_bounds = array<i64: 1, 128>}, {pipeline_mode = #tpu.pipeline_mode<synchronous>, transform_indices = @transform_7, window_bounds = array<i64: 128, 8>}, {pipeline_mode = #tpu.pipeline_mode<synchronous>, transform_indices = @transform_8, window_bounds = array<i64: 1, 8>}, {transform_indices = @transform_9, window_bounds = array<i64: 16, 8>}]} {
    %c0 = arith.constant 0 : index
    %c0_0 = arith.constant 0 : index
    %0 = vector.load %arg1[%c0, %c0_0] : memref<16x8xbf16, #tpu.memory_space<vmem>>, vector<16x8xbf16>
    %c0_1 = arith.constant 0 : index
    %c0_2 = arith.constant 0 : index
    %1 = vector.load %arg2[%c0_1, %c0_2] : memref<8x128xbf16, #tpu.memory_space<vmem>>, vector<8x128xbf16>
    %cst = arith.constant dense<0.000000e+00> : vector<16x128xf32>
    %2 = tpu.matmul %0, %1, %cst {dimension_numbers = #tpu.dot_dimension_numbers<[1], [0], [0], [1], [0, 0, 1, 1], [], []>} : vector<16x8xbf16>, vector<8x128xbf16>, vector<16x128xf32> -> vector<16x128xf32>
    %c0_3 = arith.constant 0 : index
    %c0_4 = arith.constant 0 : index
    %3 = vector.load %arg3[%c0_3, %c0_4] : memref<1x128xf32, #tpu.memory_space<vmem>>, vector<1x128xf32>
    %4 = vector.broadcast %3 : vector<1x128xf32> to vector<16x128xf32>
    %5 = arith.addf %2, %4 : vector<16x128xf32>
    %cst_5 = arith.constant 0.000000e+00 : f32
    %6 = vector.broadcast %cst_5 : f32 to vector<16x128xf32>
    %7 = arith.maximumf %5, %6 : vector<16x128xf32>
    %8 = arith.truncf %7 : vector<16x128xf32> to vector<16x128xbf16>
    %c0_6 = arith.constant 0 : index
    %c0_7 = arith.constant 0 : index
    %9 = vector.load %arg4[%c0_6, %c0_7] : memref<128x128xbf16, #tpu.memory_space<vmem>>, vector<128x128xbf16>
    %cst_8 = arith.constant dense<0.000000e+00> : vector<16x128xf32>
    %10 = tpu.matmul %8, %9, %cst_8 {dimension_numbers = #tpu.dot_dimension_numbers<[1], [0], [0], [1], [0, 0, 1, 1], [], []>} : vector<16x128xbf16>, vector<128x128xbf16>, vector<16x128xf32> -> vector<16x128xf32>
    %c0_9 = arith.constant 0 : index
    %c0_10 = arith.constant 0 : index
    %11 = vector.load %arg5[%c0_9, %c0_10] : memref<1x128xf32, #tpu.memory_space<vmem>>, vector<1x128xf32>
    %12 = vector.broadcast %11 : vector<1x128xf32> to vector<16x128xf32>
    %13 = arith.addf %10, %12 : vector<16x128xf32>
    %cst_11 = arith.constant 0.000000e+00 : f32
    %14 = vector.broadcast %cst_11 : f32 to vector<16x128xf32>
    %15 = arith.maximumf %13, %14 : vector<16x128xf32>
    %16 = arith.truncf %15 : vector<16x128xf32> to vector<16x128xbf16>
    %c0_12 = arith.constant 0 : index
    %c0_13 = arith.constant 0 : index
    %17 = vector.load %arg6[%c0_12, %c0_13] : memref<128x128xbf16, #tpu.memory_space<vmem>>, vector<128x128xbf16>
    %cst_14 = arith.constant dense<0.000000e+00> : vector<16x128xf32>
    %18 = tpu.matmul %16, %17, %cst_14 {dimension_numbers = #tpu.dot_dimension_numbers<[1], [0], [0], [1], [0, 0, 1, 1], [], []>} : vector<16x128xbf16>, vector<128x128xbf16>, vector<16x128xf32> -> vector<16x128xf32>
    %c0_15 = arith.constant 0 : index
    %c0_16 = arith.constant 0 : index
    %19 = vector.load %arg7[%c0_15, %c0_16] : memref<1x128xf32, #tpu.memory_space<vmem>>, vector<1x128xf32>
    %20 = vector.broadcast %19 : vector<1x128xf32> to vector<16x128xf32>
    %21 = arith.addf %18, %20 : vector<16x128xf32>
    %cst_17 = arith.constant 0.000000e+00 : f32
    %22 = vector.broadcast %cst_17 : f32 to vector<16x128xf32>
    %23 = arith.maximumf %21, %22 : vector<16x128xf32>
    %24 = arith.truncf %23 : vector<16x128xf32> to vector<16x128xbf16>
    %c0_18 = arith.constant 0 : index
    %c0_19 = arith.constant 0 : index
    %25 = vector.load %arg8[%c0_18, %c0_19] : memref<128x8xbf16, #tpu.memory_space<vmem>>, vector<128x8xbf16>
    %cst_20 = arith.constant dense<0.000000e+00> : vector<16x8xf32>
    %26 = tpu.matmul %24, %25, %cst_20 {dimension_numbers = #tpu.dot_dimension_numbers<[1], [0], [0], [1], [0, 0, 1, 1], [], []>} : vector<16x128xbf16>, vector<128x8xbf16>, vector<16x8xf32> -> vector<16x8xf32>
    %c0_21 = arith.constant 0 : index
    %c0_22 = arith.constant 0 : index
    %27 = vector.load %arg9[%c0_21, %c0_22] : memref<1x8xf32, #tpu.memory_space<vmem>>, vector<1x8xf32>
    %28 = vector.broadcast %27 : vector<1x8xf32> to vector<16x8xf32>
    %29 = arith.addf %26, %28 : vector<16x8xf32>
    %c0_23 = arith.constant 0 : index
    %c0_24 = arith.constant 0 : index
    %30 = vector.load %arg10[%c0_23, %c0_24] : memref<16x8xf32, #tpu.memory_space<vmem>>, vector<16x8xf32>
    tpu.vector_store %arg10[%c0_23, %c0_24], %29 {strides = array<i32>} : memref<16x8xf32, #tpu.memory_space<vmem>>, vector<16x8xf32>,
    return
  }
  func.func @transform_0(%arg0: i32) -> (i32, i32) {
    %c0_i32 = arith.constant 0 : i32
    %c0_i32_0 = arith.constant 0 : i32
    return %arg0, %c0_i32 : i32, i32
  }
  func.func @transform_1(%arg0: i32) -> (i32, i32) {
    %c0_i32 = arith.constant 0 : i32
    %c0_i32_0 = arith.constant 0 : i32
    %c0_i32_1 = arith.constant 0 : i32
    return %c0_i32, %c0_i32_0 : i32, i32
  }
  func.func @transform_2(%arg0: i32) -> (i32, i32) {
    %c0_i32 = arith.constant 0 : i32
    %c0_i32_0 = arith.constant 0 : i32
    %c0_i32_1 = arith.constant 0 : i32
    return %c0_i32, %c0_i32_0 : i32, i32
  }
  func.func @transform_3(%arg0: i32) -> (i32, i32) {
    %c0_i32 = arith.constant 0 : i32
    %c0_i32_0 = arith.constant 0 : i32
    %c0_i32_1 = arith.constant 0 : i32
    return %c0_i32, %c0_i32_0 : i32, i32
  }
  func.func @transform_4(%arg0: i32) -> (i32, i32) {
    %c0_i32 = arith.constant 0 : i32
    %c0_i32_0 = arith.constant 0 : i32
    %c0_i32_1 = arith.constant 0 : i32
    return %c0_i32, %c0_i32_0 : i32, i32
  }
  func.func @transform_5(%arg0: i32) -> (i32, i32) {
    %c0_i32 = arith.constant 0 : i32
    %c0_i32_0 = arith.constant 0 : i32
    %c0_i32_1 = arith.constant 0 : i32
    return %c0_i32, %c0_i32_0 : i32, i32
  }
  func.func @transform_6(%arg0: i32) -> (i32, i32) {
    %c0_i32 = arith.constant 0 : i32
    %c0_i32_0 = arith.constant 0 : i32
    %c0_i32_1 = arith.constant 0 : i32
    return %c0_i32, %c0_i32_0 : i32, i32
  }
  func.func @transform_7(%arg0: i32) -> (i32, i32) {
    %c0_i32 = arith.constant 0 : i32
    %c0_i32_0 = arith.constant 0 : i32
    %c0_i32_1 = arith.constant 0 : i32
    return %c0_i32, %c0_i32_0 : i32, i32
  }
  func.func @transform_8(%arg0: i32) -> (i32, i32) {
    %c0_i32 = arith.constant 0 : i32
    %c0_i32_0 = arith.constant 0 : i32
    %c0_i32_1 = arith.constant 0 : i32
    return %c0_i32, %c0_i32_0 : i32, i32
  }
  func.func @transform_9(%arg0: i32) -> (i32, i32) {
    %c0_i32 = arith.constant 0 : i32
    %c0_i32_0 = arith.constant 0 : i32
    return %arg0, %c0_i32 : i32, i32
  }
}

</mosaic_0001>

<bundles_post_ra>
// kernel: tpu_custom_call.1
= control target key start
LH: loop header
LB: loop body
LE: loop exit
PB: predicated region body
PF: predicated region fallthrough
CT: control target
= control target key end

     0   :  { %14 = vsyncpa [#allocation3], 0  ;;  %s504_s12 = smov [#allocation2]   ;;  %s505_s14 = smov 64   ;;  %s635_s0 = inlined_call_operand.vmem [shape: bf16[16,8], index: 0, kind: input, shape index: {}]   ;;  %s636_s1 = inlined_call_operand.vmem [shape: bf16[8,128], index: 1, kind: input, shape index: {}]   ;;  %s637_s2 = inlined_call_operand.vmem [shape: f32[1,128], index: 2, kind: input, shape index: {}]   ;;  %s638_s3 = inlined_call_operand.vmem [shape: bf16[128,128], index: 3, kind: input, shape index: {}]   ;;  %s639_s4 = inlined_call_operand.vmem [shape: f32[1,128], index: 4, kind: input, shape index: {}]   ;;  %s640_s5 = inlined_call_operand.hbm [shape: bf16[128,128], index: 5, kind: input, shape index: {}]   ;;  %s641_s6 = inlined_call_operand.vmem [shape: f32[1,128], index: 6, kind: input, shape index: {}]   ;;  %s642_s7 = inlined_call_operand.vmem [shape: bf16[128,8], index: 7, kind: input, shape index: {}]   ;;  %s643_s8 = inlined_call_operand.vmem [shape: f32[1,8], index: 8, kind: input, shape index: {}]   ;;  %s644_s9 = inlined_call_operand.vmem [shape: f32[16,8], index: 9, kind: output, shape index: {}]  }
   0x1   :  { %s29_s11 = sshll.u32 %s640_s5, 4  ;;  %s31_s13 = sshll.u32 %s504_s12, 4  ;;  %s30_s11 = int_to_ptr.hbm [resolvable:$true] %s29_s11  ;;  %s32_s13 = int_to_ptr.vmem [resolvable:$true] %s31_s13 }
   0x2   :  { %s506_s15 = smov 4  }
   0x3   :  { %37 = dma.hbm_to_vmem [thread:$0]  %s30_s11, 1024, %s32_s13, [#allocation3], %s505_s14, %s505_s14, %s506_s15  }
   0x4   :  { %502 = dma.done.wait [#allocation3], 1024  }
   0x5   :  { %503 = vsyncadd [#allocation3], 4294966272  ;;  %vm65_vm0 = vcmask 1043456   ;;  %v51_v0 = vld [vmem:[%s636_s1] sm:$0xf]  ;;  %v454_v1 = vld [vmem:[%s638_s3 + $0x38] sm:$0xff] }
   0x6   :  { %v67_v2 = vsel %vm65_vm0, %v51_v0, 0  ;;  %v446_v3 = vld [vmem:[%s635_s0] sm:$0xff]  ;;  %vm61_vm1 = vcmask 64512   ;;  %154 = vmatpush.bf16.msra.mxu1 %v454_v1  ;;  %v453_v4 = vld [vmem:[%s638_s3 + $0x30] sm:$0xff]  ;;  %v452_v5 = vld [vmem:[%s638_s3 + $0x28] sm:$0xff] }
   0x7   :  { %76 = vmatpush.bf16.msra.mxu0 %v67_v2  ;;  %v451_v6 = vld [vmem:[%s638_s3 + $0x20] sm:$0xff]  ;;  %v450_v7 = vld [vmem:[%s638_s3 + $0x18] sm:$0xff]  ;;  %v449_v8 = vld [vmem:[%s638_s3 + $0x10] sm:$0xff] }
   0x8   :  { %v448_v9 = vld [vmem:[%s638_s3 + $0x8] sm:$0xff]  ;;  %v447_v10 = vld [vmem:[%s638_s3] sm:$0xff]  ;;  %v462_v11 = vld [vmem:[#allocation2 + $0x38] sm:$0xff] }
   0x9   :  { %239 = vmatpush.bf16.msra.mxu2 %v462_v11  ;;  %v461_v12 = vld [vmem:[#allocation2 + $0x30] sm:$0xff]  ;;  %v460_v13 = vld [vmem:[#allocation2 + $0x28] sm:$0xff]  ;;  %v459_v14 = vld [vmem:[#allocation2 + $0x20] sm:$0xff] }
   0xa   :  { %349 = vmatmul.msk.bf16.vlgmr.msra.gmra.mxu0 %vm61_vm1, %v446_v3  ;;  %155 = vmatpush.bf16.msra.mxu1 %v453_v4  ;;  %v474_v16 = vld [vmem:[%s637_s2] ss:$0 sm:$0xff]  ;;  %v458_v23 = vld [vmem:[#allocation2 + $0x18] sm:$0xff]  ;;  %v457_v24 = vld [vmem:[#allocation2 + $0x10] sm:$0xff] }
   0xb   :  { %v456_v25 = vld [vmem:[#allocation2 + $0x8] sm:$0xff]  ;;  %v455_v26 = vld [vmem:[#allocation2] sm:$0xff]  ;;  %v470_v27 = vld [vmem:[%s642_s7 + $0x38] sm:$0xff] }
   0xc   :  { %324 = vmatpush.bf16.msra.mxu3 %v470_v27  ;;  %v469_v28 = vld [vmem:[%s642_s7 + $0x30] sm:$0xff]  ;;  %v468_v29 = vld [vmem:[%s642_s7 + $0x28] sm:$0xff]  ;;  %v467_v30 = vld [vmem:[%s642_s7 + $0x20] sm:$0xff] }
   0xd   :  { %240 = vmatpush.bf16.msra.mxu2 %v461_v12  ;;  %v475_v32 = vld [vmem:[%s639_s4] ss:$0 sm:$0xff]  ;;  %v466_v39 = vld [vmem:[%s642_s7 + $0x18] sm:$0xff]  ;;  %v465_v40 = vld [vmem:[%s642_s7 + $0x10] sm:$0xff] }
   0xe   :  { %156 = vmatpush.bf16.msra.mxu1 %v452_v5  ;;  %v464_v41 = vld [vmem:[%s642_s7 + $0x8] sm:$0xff]  ;;  %v463_v42 = vld [vmem:[%s642_s7] sm:$0xff] }
   0xf   :  { %v476_v44 = vld [vmem:[%s641_s6] ss:$0 sm:$0xff] }
  0x10   :  { %325 = vmatpush.bf16.msra.mxu3 %v469_v28  ;;  %v477_v51 = vld [vmem:[%s643_s8] ss:$0 sm:$0xff] }
  0x11   :  { %241 = vmatpush.bf16.msra.mxu2 %v460_v13 }
  0x12   :  { %157 = vmatpush.bf16.msra.mxu1 %v451_v6 }
  0x14   :  { %326 = vmatpush.bf16.msra.mxu3 %v468_v29 }
  0x15   :  { %242 = vmatpush.bf16.msra.mxu2 %v459_v14 }
  0x16   :  { %158 = vmatpush.bf16.msra.mxu1 %v450_v7 }
  0x18   :  { %327 = vmatpush.bf16.msra.mxu3 %v467_v30 }
  0x19   :  { %243 = vmatpush.bf16.msra.mxu2 %v458_v23 }
  0x1a   :  { %159 = vmatpush.bf16.msra.mxu1 %v449_v8 }
  0x1c   :  { %328 = vmatpush.bf16.msra.mxu3 %v466_v39 }
  0x1d   :  { %244 = vmatpush.bf16.msra.mxu2 %v457_v24 }
  0x1e   :  { %160 = vmatpush.bf16.msra.mxu1 %v448_v9 }
  0x20   :  { %329 = vmatpush.bf16.msra.mxu3 %v465_v40 }
  0x21   :  { %245 = vmatpush.bf16.msra.mxu2 %v456_v25 }
  0x22   :  { %161 = vmatpush.bf16.msra.mxu1 %v447_v10 }
  0x24   :  { %330 = vmatpush.bf16.msra.mxu3 %v464_v41 }
  0x25   :  { %246 = vmatpush.bf16.msra.mxu2 %v455_v26 }
  0x28   :  { %331 = vmatpush.bf16.msra.mxu3 %v463_v42 }
  0x87   :  { %v78_v15 = vpop.f32.mrf.mxu0 }
  0x88   :  { %v79_v17 = vadd.f32 %v474_v16, %v78_v15 }
  0x8a   :  { %v83_v20 = vmax.f32 %v79_v17, 0.0 }
  0x8f   :  { %v80_v18 = vpop.f32.mrf.mxu0 }
  0x90   :  { %v81_v19 = vadd.f32 %v474_v16, %v80_v18 }
  0x92   :  { %v84_v21 = vmax.f32 %v81_v19, 0.0 }
  0x94   :  { %v85_v22 = vpack.c.bf16 %v84_v21, %v83_v20 }
  0x96   :  { %162 = vmatmul.bf16.vlgmr.msra.gmra.mxu1 %v85_v22 }
 0x113   :  { %v163_v31 = vpop.f32.mrf.mxu1 }
 0x114   :  { %v164_v33 = vadd.f32 %v475_v32, %v163_v31 }
 0x116   :  { %v168_v36 = vmax.f32 %v164_v33, 0.0 }
 0x11b   :  { %v165_v34 = vpop.f32.mrf.mxu1 }
 0x11c   :  { %v166_v35 = vadd.f32 %v475_v32, %v165_v34 }
 0x11e   :  { %v169_v37 = vmax.f32 %v166_v35, 0.0 }
 0x120   :  { %v170_v38 = vpack.c.bf16 %v169_v37, %v168_v36 }
 0x122   :  { %247 = vmatmul.bf16.vlgmr.msra.gmra.mxu2 %v170_v38 }
 0x1a5   :  { %v248_v43 = vpop.f32.mrf.mxu2 }
 0x1a6   :  { %v249_v45 = vadd.f32 %v476_v44, %v248_v43 }
 0x1a8   :  { %v253_v48 = vmax.f32 %v249_v45, 0.0 }
 0x1ad   :  { %v250_v46 = vpop.f32.mrf.mxu2 }
 0x1ae   :  { %v251_v47 = vadd.f32 %v476_v44, %v250_v46 }
 0x1b0   :  { %v254_v49 = vmax.f32 %v251_v47, 0.0 }
 0x1b2   :  { %v255_v50 = vpack.c.bf16 %v254_v49, %v253_v48 }
 0x1b4   :  { %332 = vmatmul.bf16.vlgmr.msra.gmra.mxu3 %v255_v50 }
 0x237   :  { %v333_v52 = vpop.f32.mrf.mxu3 }
 0x238   :  { %v334_v53 = vadd.f32 %v477_v51, %v333_v52 }
 0x23a   :  { %338 = vst.msk [vmem:[%s644_s9] sm:$0xff] %vm61_vm1, %v334_v53 }
 0x23f   :  { %v335_v54 = vpop.f32.mrf.mxu3 }
 0x240   :  { %v336_v55 = vadd.f32 %v477_v51, %v335_v54 }
 0x242   :  { %339 = vst.msk [vmem:[%s644_s9 + $0x8] sm:$0xff] %vm61_vm1, %v336_v55 }
 0x243   :  { %344 = vsyncpa [#allocation3], 1 }

</bundles_post_ra>
